<compile_context>
chip_gen: v7x
topology: tpu7x:2x2x1
jax: 0.10.0
libtpu: 0.0.40
codegen_flags: <defaults>
</compile_context>

<pallas_src>
import numpy as np

import jax
import jax.numpy as jnp
from jax import lax
from jax.experimental import pallas as pl
from jax.experimental.pallas import tpu as pltpu

KSIZE = 8
STRIDE = 4


# ----------------------------- Pallas kernels -------------------------------
# scal_ref (SMEM, f32[2]) = [prelu_alpha, residual_scale]

def _gemm_bias_prelu(w, p, b, alpha):
    acc = jnp.dot(w, p, preferred_element_type=jnp.float32)   # (Cout, TS) f32
    acc = acc + b                                             # (Cout, 1) bias
    return jnp.where(acc >= 0.0, acc, alpha * acc)            # PReLU (scalar)


def conv_kernel(scal_ref, w_ref, b_ref, p_ref, out_ref):
    out_ref[...] = _gemm_bias_prelu(w_ref[...], p_ref[...], b_ref[...],
                                    scal_ref[0])


def conv_residual_kernel(scal_ref, w_ref, b_ref, p_ref, res_ref, out_ref):
    # fused: prelu(W @ P + b) + res_scale * residual
    y = _gemm_bias_prelu(w_ref[...], p_ref[...], b_ref[...], scal_ref[0])
    out_ref[...] = y + scal_ref[1] * res_ref[...]


# ------------------------------ tiling helpers -------------------------------

_S_TILE_CANDIDATES = (2048, 1024, 512, 256, 128)
_PATCH_TILE_BUDGET = 4 * 1024 * 1024      # bytes per (K, TS) patch buffer
_VMEM_LIMIT = 32 * 1024 * 1024            # explicit scoped-VMEM budget (safe on
                                          # v5e/v6e/v7x; >= all plans below)


def _choose_s_tile(s, k_rows, itemsize):
    """Pick (padded_s, tile) for the lane/spatial dim of a (K, S) patch slab."""
    cap = max(128, (_PATCH_TILE_BUDGET // (k_rows * itemsize)) // 128 * 128)
    if s <= cap:
        return s, s                        # one full-extent tile
    for t in _S_TILE_CANDIDATES:
        if t <= cap and s % t == 0:
            return s, t
    t = min(512, cap)
    return ((s + t - 1) // t) * t, t       # pad S up; caller slices back


# ------------------------- Pallas GEMM wrappers -------------------------------

def conv_gemm(patches, w_mat, bias, alpha, residual=None, res_scale=1.0,
              compute_dtype=jnp.bfloat16):
    """out[n] = prelu(w_mat @ patches[n] + bias) [+ res_scale * residual[n]].

    patches : (N, K, S)    -> cast to compute_dtype
    w_mat   : (Cout, K)    -> cast to compute_dtype
    residual: (N, Cout, S) f32 (optional)
    returns : (N, Cout, S) f32
    """
    n, k, s = patches.shape
    c = w_mat.shape[0]
    s_pad, ts = _choose_s_tile(s, k, np.dtype(compute_dtype).itemsize)

    p = patches.astype(compute_dtype)
    if s_pad != s:
        p = jnp.pad(p, ((0, 0), (0, 0), (0, s_pad - s)))
    w = w_mat.astype(compute_dtype)
    b = bias.reshape(c, 1).astype(jnp.float32)
    scal = jnp.stack([jnp.asarray(alpha, jnp.float32),
                      jnp.asarray(res_scale, jnp.float32)])

    in_specs = [
        pl.BlockSpec(memory_space=pltpu.MemorySpace.SMEM),          # [alpha, scale]
        pl.BlockSpec((c, k), lambda ni, si: (0, 0)),                # weights
        pl.BlockSpec((c, 1), lambda ni, si: (0, 0)),                # bias
        pl.BlockSpec((None, k, ts), lambda ni, si: (ni, 0, si)),    # patch tile
    ]
    args = [scal, w, b, p]
    if residual is None:
        kernel = conv_kernel
    else:
        kernel = conv_residual_kernel
        r = residual.astype(jnp.float32)
        if s_pad != s:
            r = jnp.pad(r, ((0, 0), (0, 0), (0, s_pad - s)))
        in_specs.append(pl.BlockSpec((None, c, ts), lambda ni, si: (ni, 0, si)))
        args.append(r)

    out = pl.pallas_call(
        kernel,
        out_shape=jax.ShapeDtypeStruct((n, c, s_pad), jnp.float32),
        grid=(n, s_pad // ts),
        in_specs=in_specs,
        out_specs=pl.BlockSpec((None, c, ts), lambda ni, si: (ni, 0, si)),
        compiler_params=pltpu.CompilerParams(
            dimension_semantics=("parallel", "parallel"),
            vmem_limit_bytes=_VMEM_LIMIT),
    )(*args)
    return out[:, :, :s] if s_pad != s else out


def deconv_phase_gemm(patches, w_ph, bias, alpha, residual_ph, res_scale,
                      compute_dtype=jnp.bfloat16):
    """16-phase (sub-pixel) transposed conv + fused residual.

    For each phase ph:
      out[ph, n] = prelu(w_ph[ph] @ patches[n] + bias) + res_scale*residual_ph[ph, n]

    patches    : (N, K2, S)        (3x3 patches of the low-res input, K2 = 9*Cin)
    w_ph       : (16, Cout, K2)
    residual_ph: (16, N, Cout, S)  f32
    returns    : (16, N, Cout, S)  f32
    """
    n, k2, s = patches.shape
    nph, c, _ = w_ph.shape
    s_pad, ts = _choose_s_tile(s, k2, np.dtype(compute_dtype).itemsize)

    p = patches.astype(compute_dtype)
    r = residual_ph.astype(jnp.float32)
    if s_pad != s:
        p = jnp.pad(p, ((0, 0), (0, 0), (0, s_pad - s)))
        r = jnp.pad(r, ((0, 0), (0, 0), (0, 0), (0, s_pad - s)))
    w = w_ph.astype(compute_dtype)
    b = bias.reshape(c, 1).astype(jnp.float32)
    scal = jnp.stack([jnp.asarray(alpha, jnp.float32),
                      jnp.asarray(res_scale, jnp.float32)])

    # phase axis innermost: the (K2, TS) patch tile is revisited for all 16
    # phases without re-DMA; only the tiny (Cout, K2) weight block changes.
    out = pl.pallas_call(
        conv_residual_kernel,
        out_shape=jax.ShapeDtypeStruct((nph, n, c, s_pad), jnp.float32),
        grid=(n, s_pad // ts, nph),
        in_specs=[
            pl.BlockSpec(memory_space=pltpu.MemorySpace.SMEM),
            pl.BlockSpec((None, c, k2), lambda ni, si, ph: (ph, 0, 0)),
            pl.BlockSpec((c, 1), lambda ni, si, ph: (0, 0)),
            pl.BlockSpec((None, k2, ts), lambda ni, si, ph: (ni, 0, si)),
            pl.BlockSpec((None, None, c, ts), lambda ni, si, ph: (ph, ni, 0, si)),
        ],
        out_specs=pl.BlockSpec((None, None, c, ts),
                               lambda ni, si, ph: (ph, ni, 0, si)),
        compiler_params=pltpu.CompilerParams(
            dimension_semantics=("parallel", "parallel", "arbitrary"),
            vmem_limit_bytes=_VMEM_LIMIT),
    )(scal, w, b, p, r)
    return out[..., :s] if s_pad != s else out


# ---------------------------- weight preparation -----------------------------

def _conv_w_to_mat(w_oihw):
    # PyTorch Conv2d weight [Cout, Cin, kh, kw] -> [Cout, Cin*kh*kw]
    # (feature order (ci, ky, kx) matches conv_general_dilated_patches).
    co, ci, kh, kw = w_oihw.shape
    return w_oihw.reshape(co, ci * kh * kw)


# Per-phase taps of the flipped (forward-equivalent) k=8/s=4 transposed-conv
# kernel, indexed by the 3x3 window offset around the low-res pixel:
#   phase r uses flipped-kernel taps _PHASE_TAPS[r][wy] at window row wy
#   (None -> that window row contributes zero for this phase).
_PHASE_TAPS = ((1, 5, None), (0, 4, None), (None, 3, 7), (None, 2, 6))


def _deconv_phase_weights(w_t):
    # PyTorch ConvTranspose2d weight [Cin, Cout, kh, kw] (k=8, s=4, pad=2)
    # -> [16, Cout, 9*Cin] sub-pixel phase GEMM weights over 3x3 patches.
    ci_n, co_n, kh, kw = w_t.shape
    assert (kh, kw) == (KSIZE, KSIZE)
    wf = jnp.transpose(w_t[:, :, ::-1, ::-1], (1, 0, 2, 3))   # [Cout, Cin, 8, 8]
    phases = []
    for r in range(STRIDE):
        for t in range(STRIDE):
            wph = jnp.zeros((co_n, ci_n, 3, 3), wf.dtype)
            for wy, ky in enumerate(_PHASE_TAPS[r]):
                if ky is None:
                    continue
                for wx, kx in enumerate(_PHASE_TAPS[t]):
                    if kx is None:
                        continue
                    wph = wph.at[:, :, wy, wx].set(wf[:, :, ky, kx])
            phases.append(wph.reshape(co_n, ci_n * 9))
    return jnp.stack(phases, axis=0)                          # [16, Cout, 9*Cin]


# ------------------------------- forward pass --------------------------------

def down_block_forward(x_nchw, params, compute_dtype=jnp.bfloat16):
    """DBPN DownBlock:  l0 = conv1(x); h0 = deconv2(l0); return conv3(h0-x)+l0."""
    k, s = KSIZE, STRIDE
    pad_fwd = (k - 1) // 2                     # EasyConv2d 'same' fwd padding (=3)
    dn = ("NCHW", "OIHW", "NCHW")
    cdt = compute_dtype

    x = x_nchw.astype(jnp.float32)
    n, c, h, w = x.shape
    if h % s or w % s:
        raise ValueError("DownBlock requires H and W divisible by the stride.")
    hl, wl = h // s, w // s
    sl = hl * wl

    # ---- l0 = prelu(down_conv1(x))  (stride-4 conv as im2col GEMM) ----------
    p1 = lax.conv_general_dilated_patches(
        x.astype(cdt), (k, k), (s, s), ((pad_fwd, pad_fwd),) * 2,
        dimension_numbers=dn)                              # (N, C*k*k, Hl, Wl)
    l0 = conv_gemm(p1.reshape(n, c * k * k, sl),
                   params["w1m"], params["b1"], params["a1"],
                   compute_dtype=cdt)                      # (N, C, Sl) f32

    # ---- h0 - x  via 16-phase sub-pixel decomposition of down_conv2 ---------
    l0_img = l0.reshape(n, c, hl, wl)
    p2 = lax.conv_general_dilated_patches(
        l0_img.astype(cdt), (3, 3), (1, 1), ((1, 1), (1, 1)),
        dimension_numbers=dn)                              # (N, C*9, Hl, Wl)
    # residual phases: xph[r*4+t, n, c, j, i] = x[n, c, 4j+r, 4i+t]
    xph = jnp.transpose(x.reshape(n, c, hl, s, wl, s),
                        (3, 5, 0, 1, 2, 4)).reshape(s * s, n, c, sl)
    hmx_ph = deconv_phase_gemm(p2.reshape(n, c * 9, sl),
                               params["w2ph"], params["b2"], params["a2"],
                               residual_ph=xph, res_scale=-1.0,
                               compute_dtype=cdt)          # (16, N, C, Sl)
    # assemble (h0 - x) back to NCHW (pixel shuffle of the 16 phases)
    hmx = jnp.transpose(hmx_ph.reshape(s, s, n, c, hl, wl),
                        (2, 3, 4, 0, 5, 1)).reshape(n, c, h, w)

    # ---- out = prelu(down_conv3(h0 - x)) + l0 --------------------------------
    p3 = lax.conv_general_dilated_patches(
        hmx.astype(cdt), (k, k), (s, s), ((pad_fwd, pad_fwd),) * 2,
        dimension_numbers=dn)                              # (N, C*k*k, Hl, Wl)
    out = conv_gemm(p3.reshape(n, c * k * k, sl),
                    params["w3m"], params["b3"], params["a3"],
                    residual=l0, res_scale=1.0,
                    compute_dtype=cdt)                     # (N, C, Sl) f32
    return out.reshape(n, c, hl, wl)                       # already NCHW


# ------------------------- pure-JAX reference (check) ------------------------

def _ref_forward(x, raw, dt):
    """Reference DownBlock with the same bf16-operand / f32-accumulate scheme."""
    k, s = KSIZE, STRIDE
    pad_fwd = (k - 1) // 2
    q = k % 2                              # output_padding ('same' transposed)
    p_t = (k + q - s) // 2                 # transposed-conv padding

    def prelu(y, a):
        return jnp.where(y >= 0, y, a * y)

    def conv(v, wgt, b, a):
        y = lax.conv_general_dilated(
            v.astype(dt), wgt.astype(dt), (s, s),
            ((pad_fwd, pad_fwd), (pad_fwd, pad_fwd)),
            dimension_numbers=("NCHW", "OIHW", "NCHW"),
            preferred_element_type=jnp.float32)
        return prelu(y + b.reshape(1, -1, 1, 1), a)

    def deconv(v, wgt, b, a):
        w_eq = jnp.transpose(wgt[:, :, ::-1, ::-1], (1, 0, 2, 3))   # OIHW
        lo, hi = k - 1 - p_t, k - 1 - p_t + q
        y = lax.conv_general_dilated(
            v.astype(dt), w_eq.astype(dt), (1, 1), ((lo, hi), (lo, hi)),
            lhs_dilation=(s, s),
            dimension_numbers=("NCHW", "OIHW", "NCHW"),
            preferred_element_type=jnp.float32)
        return prelu(y + b.reshape(1, -1, 1, 1), a)

    l0 = conv(x, raw["w1"], raw["b1"], raw["a1"])
    h0 = deconv(l0, raw["w2"], raw["b2"], raw["a2"])
    l1 = conv(h0 - x, raw["w3"], raw["b3"], raw["a3"])
    return l1 + l0


# ----------------------------------- main ------------------------------------

if __name__ == "__main__":
    N, C, H, W = 2, 8, 16, 16          # num_filter = 8
    key = jax.random.PRNGKey(0)
    ks = jax.random.split(key, 7)
    sc = 0.05

    raw = {
        "w1": jax.random.normal(ks[0], (C, C, KSIZE, KSIZE), jnp.float32) * sc,
        "b1": jax.random.normal(ks[1], (C,), jnp.float32) * sc,
        "w2": jax.random.normal(ks[2], (C, C, KSIZE, KSIZE), jnp.float32) * sc,
        "b2": jax.random.normal(ks[3], (C,), jnp.float32) * sc,
        "w3": jax.random.normal(ks[4], (C, C, KSIZE, KSIZE), jnp.float32) * sc,
        "b3": jax.random.normal(ks[5], (C,), jnp.float32) * sc,
        "a1": jnp.float32(0.25), "a2": jnp.float32(0.25),
        "a3": jnp.float32(0.25),
    }
    params = {
        "w1m": _conv_w_to_mat(raw["w1"]),
        "w2ph": _deconv_phase_weights(raw["w2"]),
        "w3m": _conv_w_to_mat(raw["w3"]),
        "b1": raw["b1"], "b2": raw["b2"], "b3": raw["b3"],
        "a1": raw["a1"], "a2": raw["a2"], "a3": raw["a3"],
    }

    x = jax.random.normal(ks[6], (N, C, H, W), jnp.float32)

    out = jax.block_until_ready(jax.jit(down_block_forward)(x, params))
    ref = jax.block_until_ready(_ref_forward(x, raw, jnp.bfloat16))

    assert out.shape == (N, C, H // STRIDE, W // STRIDE), out.shape
    err = float(jnp.max(jnp.abs(out - ref)))
    assert jnp.allclose(out, ref, rtol=1e-2, atol=1e-2), err
    print("KERNEL_OK")
</pallas_src>

<mosaic_0001>
module attributes {stable_mosaic.version = 11 : i64} {
  func.func @conv_kernel(%arg0: i32, %arg1: i32, %arg2: memref<2xf32, #tpu.memory_space<smem>>, %arg3: memref<8x512xbf16, #tpu.memory_space<vmem>>, %arg4: memref<8x1xf32, #tpu.memory_space<vmem>>, %arg5: memref<1x512x16xbf16, #tpu.memory_space<vmem>>, %arg6: memref<1x8x16xf32, #tpu.memory_space<vmem>>) attributes {dimension_semantics = [#tpu.dimension_semantics<parallel>, #tpu.dimension_semantics<parallel>], iteration_bounds = array<i64: 2, 1>, scalar_prefetch = 0 : i64, scratch_operands = 0 : i64, tpu.core_type = #tpu.core_type<tc>, window_params = [{transform_indices = @transform_0, window_bounds = array<i64: 2>}, {pipeline_mode = #tpu.pipeline_mode<synchronous>, transform_indices = @transform_1, window_bounds = array<i64: 8, 512>}, {pipeline_mode = #tpu.pipeline_mode<synchronous>, transform_indices = @transform_2, window_bounds = array<i64: 8, 1>}, {transform_indices = @transform_3, window_bounds = array<i64: 1, 512, 16>}, {transform_indices = @transform_4, window_bounds = array<i64: 1, 8, 16>}]} {
    %c0 = arith.constant 0 : index
    %c0_0 = arith.constant 0 : index
    %0 = vector.load %arg3[%c0, %c0_0] : memref<8x512xbf16, #tpu.memory_space<vmem>>, vector<8x512xbf16>
    %c0_1 = arith.constant 0 : index
    %c0_2 = arith.constant 0 : index
    %c0_3 = arith.constant 0 : index
    %1 = vector.load %arg5[%c0_1, %c0_2, %c0_3] : memref<1x512x16xbf16, #tpu.memory_space<vmem>>, vector<1x512x16xbf16>
    %2 = vector.shape_cast %1 : vector<1x512x16xbf16> to vector<512x16xbf16>
    %c0_4 = arith.constant 0 : index
    %c0_5 = arith.constant 0 : index
    %3 = vector.load %arg4[%c0_4, %c0_5] : memref<8x1xf32, #tpu.memory_space<vmem>>, vector<8x1xf32>
    %c0_6 = arith.constant 0 : index
    %4 = memref.load %arg2[%c0_6] : memref<2xf32, #tpu.memory_space<smem>>
    %cst = arith.constant dense<0.000000e+00> : vector<8x16xf32>
    %5 = tpu.matmul %0, %2, %cst {dimension_numbers = #tpu.dot_dimension_numbers<[1], [0], [0], [1], [0, 0, 1, 1], [], []>} : vector<8x512xbf16>, vector<512x16xbf16>, vector<8x16xf32> -> vector<8x16xf32>
    %6 = vector.broadcast %3 : vector<8x1xf32> to vector<8x16xf32>
    %7 = arith.addf %5, %6 : vector<8x16xf32>
    %cst_7 = arith.constant 0.000000e+00 : f32
    %8 = vector.broadcast %cst_7 : f32 to vector<8x16xf32>
    %9 = arith.cmpf oge, %7, %8 : vector<8x16xf32>
    %10 = vector.broadcast %4 : f32 to vector<8x16xf32>
    %11 = arith.mulf %10, %7 : vector<8x16xf32>
    %12 = arith.select %9, %7, %11 : vector<8x16xi1>, vector<8x16xf32>
    %c0_8 = arith.constant 0 : index
    %c0_9 = arith.constant 0 : index
    %c0_10 = arith.constant 0 : index
    %13 = vector.load %arg6[%c0_8, %c0_9, %c0_10] : memref<1x8x16xf32, #tpu.memory_space<vmem>>, vector<1x8x16xf32>
    %14 = vector.shape_cast %13 : vector<1x8x16xf32> to vector<8x16xf32>
    %15 = vector.shape_cast %12 : vector<8x16xf32> to vector<1x8x16xf32>
    tpu.vector_store %arg6[%c0_8, %c0_9, %c0_10], %15 {strides = array<i32>} : memref<1x8x16xf32, #tpu.memory_space<vmem>>, vector<1x8x16xf32>,
    return
  }
  func.func @transform_0(%arg0: i32, %arg1: i32) -> i32 {
    %c0_i32 = arith.constant 0 : i32
    %c0_i32_0 = arith.constant 0 : i32
    return %c0_i32 : i32
  }
  func.func @transform_1(%arg0: i32, %arg1: i32) -> (i32, i32) {
    %c0_i32 = arith.constant 0 : i32
    %c0_i32_0 = arith.constant 0 : i32
    %c0_i32_1 = arith.constant 0 : i32
    return %c0_i32, %c0_i32_0 : i32, i32
  }
  func.func @transform_2(%arg0: i32, %arg1: i32) -> (i32, i32) {
    %c0_i32 = arith.constant 0 : i32
    %c0_i32_0 = arith.constant 0 : i32
    %c0_i32_1 = arith.constant 0 : i32
    return %c0_i32, %c0_i32_0 : i32, i32
  }
  func.func @transform_3(%arg0: i32, %arg1: i32) -> (i32, i32, i32) {
    %c0_i32 = arith.constant 0 : i32
    %c0_i32_0 = arith.constant 0 : i32
    return %arg0, %c0_i32, %arg1 : i32, i32, i32
  }
  func.func @transform_4(%arg0: i32, %arg1: i32) -> (i32, i32, i32) {
    %c0_i32 = arith.constant 0 : i32
    %c0_i32_0 = arith.constant 0 : i32
    return %arg0, %c0_i32, %arg1 : i32, i32, i32
  }
}

module attributes {stable_mosaic.version = 11 : i64} {
  func.func @conv_residual_kernel(%arg0: i32, %arg1: i32, %arg2: i32, %arg3: memref<2xf32, #tpu.memory_space<smem>>, %arg4: memref<1x8x72xbf16, #tpu.memory_space<vmem>>, %arg5: memref<8x1xf32, #tpu.memory_space<vmem>>, %arg6: memref<1x72x16xbf16, #tpu.memory_space<vmem>>, %arg7: memref<1x1x8x16xf32, #tpu.memory_space<vmem>>, %arg8: memref<1x1x8x16xf32, #tpu.memory_space<vmem>>) attributes {dimension_semantics = [#tpu.dimension_semantics<parallel>, #tpu.dimension_semantics<parallel>, #tpu.dimension_semantics<arbitrary>], iteration_bounds = array<i64: 2, 1, 16>, scalar_prefetch = 0 : i64, scratch_operands = 0 : i64, tpu.core_type = #tpu.core_type<tc>, window_params = [{transform_indices = @transform_0, window_bounds = array<i64: 2>}, {transform_indices = @transform_1, window_bounds = array<i64: 1, 8, 72>}, {pipeline_mode = #tpu.pipeline_mode<synchronous>, transform_indices = @transform_2, window_bounds = array<i64: 8, 1>}, {transform_indices = @transform_3, window_bounds = array<i64: 1, 72, 16>}, {transform_indices = @transform_4, window_bounds = array<i64: 1, 1, 8, 16>}, {transform_indices = @transform_5, window_bounds = array<i64: 1, 1, 8, 16>}]} {
    %c0 = arith.constant 0 : index
    %c0_0 = arith.constant 0 : index
    %c0_1 = arith.constant 0 : index
    %0 = vector.load %arg4[%c0, %c0_0, %c0_1] : memref<1x8x72xbf16, #tpu.memory_space<vmem>>, vector<1x8x72xbf16>
    %1 = vector.shape_cast %0 : vector<1x8x72xbf16> to vector<8x72xbf16>
    %c0_2 = arith.constant 0 : index
    %c0_3 = arith.constant 0 : index
    %c0_4 = arith.constant 0 : index
    %2 = vector.load %arg6[%c0_2, %c0_3, %c0_4] : memref<1x72x16xbf16, #tpu.memory_space<vmem>>, vector<1x72x16xbf16>
    %3 = vector.shape_cast %2 : vector<1x72x16xbf16> to vector<72x16xbf16>
    %c0_5 = arith.constant 0 : index
    %c0_6 = arith.constant 0 : index
    %4 = vector.load %arg5[%c0_5, %c0_6] : memref<8x1xf32, #tpu.memory_space<vmem>>, vector<8x1xf32>
    %c0_7 = arith.constant 0 : index
    %5 = memref.load %arg3[%c0_7] : memref<2xf32, #tpu.memory_space<smem>>
    %cst = arith.constant dense<0.000000e+00> : vector<8x16xf32>
    %6 = tpu.matmul %1, %3, %cst {dimension_numbers = #tpu.dot_dimension_numbers<[1], [0], [0], [1], [0, 0, 1, 1], [], []>} : vector<8x72xbf16>, vector<72x16xbf16>, vector<8x16xf32> -> vector<8x16xf32>
    %7 = vector.broadcast %4 : vector<8x1xf32> to vector<8x16xf32>
    %8 = arith.addf %6, %7 : vector<8x16xf32>
    %cst_8 = arith.constant 0.000000e+00 : f32
    %9 = vector.broadcast %cst_8 : f32 to vector<8x16xf32>
    %10 = arith.cmpf oge, %8, %9 : vector<8x16xf32>
    %11 = vector.broadcast %5 : f32 to vector<8x16xf32>
    %12 = arith.mulf %11, %8 : vector<8x16xf32>
    %13 = arith.select %10, %8, %12 : vector<8x16xi1>, vector<8x16xf32>
    %c1 = arith.constant 1 : index
    %14 = memref.load %arg3[%c1] : memref<2xf32, #tpu.memory_space<smem>>
    %c0_9 = arith.constant 0 : index
    %c0_10 = arith.constant 0 : index
    %c0_11 = arith.constant 0 : index
    %c0_12 = arith.constant 0 : index
    %15 = vector.load %arg7[%c0_9, %c0_10, %c0_11, %c0_12] : memref<1x1x8x16xf32, #tpu.memory_space<vmem>>, vector<1x1x8x16xf32>
    %16 = vector.shape_cast %15 : vector<1x1x8x16xf32> to vector<8x16xf32>
    %17 = vector.broadcast %14 : f32 to vector<8x16xf32>
    %18 = arith.mulf %17, %16 : vector<8x16xf32>
    %19 = arith.addf %13, %18 : vector<8x16xf32>
    %c0_13 = arith.constant 0 : index
    %c0_14 = arith.constant 0 : index
    %c0_15 = arith.constant 0 : index
    %c0_16 = arith.constant 0 : index
    %20 = vector.load %arg8[%c0_13, %c0_14, %c0_15, %c0_16] : memref<1x1x8x16xf32, #tpu.memory_space<vmem>>, vector<1x1x8x16xf32>
    %21 = vector.shape_cast %20 : vector<1x1x8x16xf32> to vector<8x16xf32>
    %22 = vector.shape_cast %19 : vector<8x16xf32> to vector<1x1x8x16xf32>
    tpu.vector_store %arg8[%c0_13, %c0_14, %c0_15, %c0_16], %22 {strides = array<i32>} : memref<1x1x8x16xf32, #tpu.memory_space<vmem>>, vector<1x1x8x16xf32>,
    return
  }
  func.func @transform_0(%arg0: i32, %arg1: i32, %arg2: i32) -> i32 {
    %c0_i32 = arith.constant 0 : i32
    %c0_i32_0 = arith.constant 0 : i32
    return %c0_i32 : i32
  }
  func.func @transform_1(%arg0: i32, %arg1: i32, %arg2: i32) -> (i32, i32, i32) {
    %c0_i32 = arith.constant 0 : i32
    %c0_i32_0 = arith.constant 0 : i32
    %c0_i32_1 = arith.constant 0 : i32
    return %arg2, %c0_i32, %c0_i32_0 : i32, i32, i32
  }
  func.func @transform_2(%arg0: i32, %arg1: i32, %arg2: i32) -> (i32, i32) {
    %c0_i32 = arith.constant 0 : i32
    %c0_i32_0 = arith.constant 0 : i32
    %c0_i32_1 = arith.constant 0 : i32
    return %c0_i32, %c0_i32_0 : i32, i32
  }
  func.func @transform_3(%arg0: i32, %arg1: i32, %arg2: i32) -> (i32, i32, i32) {
    %c0_i32 = arith.constant 0 : i32
    %c0_i32_0 = arith.constant 0 : i32
    return %arg0, %c0_i32, %arg1 : i32, i32, i32
  }
  func.func @transform_4(%arg0: i32, %arg1: i32, %arg2: i32) -> (i32, i32, i32, i32) {
    %c0_i32 = arith.constant 0 : i32
    %c0_i32_0 = arith.constant 0 : i32
    return %arg2, %arg0, %c0_i32, %arg1 : i32, i32, i32, i32
  }
  func.func @transform_5(%arg0: i32, %arg1: i32, %arg2: i32) -> (i32, i32, i32, i32) {
    %c0_i32 = arith.constant 0 : i32
    %c0_i32_0 = arith.constant 0 : i32
    return %arg2, %arg0, %c0_i32, %arg1 : i32, i32, i32, i32
  }
}

module attributes {stable_mosaic.version = 11 : i64} {
  func.func @conv_residual_kernel(%arg0: i32, %arg1: i32, %arg2: memref<2xf32, #tpu.memory_space<smem>>, %arg3: memref<8x512xbf16, #tpu.memory_space<vmem>>, %arg4: memref<8x1xf32, #tpu.memory_space<vmem>>, %arg5: memref<1x512x16xbf16, #tpu.memory_space<vmem>>, %arg6: memref<1x8x16xf32, #tpu.memory_space<vmem>>, %arg7: memref<1x8x16xf32, #tpu.memory_space<vmem>>) attributes {dimension_semantics = [#tpu.dimension_semantics<parallel>, #tpu.dimension_semantics<parallel>], iteration_bounds = array<i64: 2, 1>, scalar_prefetch = 0 : i64, scratch_operands = 0 : i64, tpu.core_type = #tpu.core_type<tc>, window_params = [{transform_indices = @transform_0, window_bounds = array<i64: 2>}, {pipeline_mode = #tpu.pipeline_mode<synchronous>, transform_indices = @transform_1, window_bounds = array<i64: 8, 512>}, {pipeline_mode = #tpu.pipeline_mode<synchronous>, transform_indices = @transform_2, window_bounds = array<i64: 8, 1>}, {transform_indices = @transform_3, window_bounds = array<i64: 1, 512, 16>}, {transform_indices = @transform_4, window_bounds = array<i64: 1, 8, 16>}, {transform_indices = @transform_5, window_bounds = array<i64: 1, 8, 16>}]} {
    %c0 = arith.constant 0 : index
    %c0_0 = arith.constant 0 : index
    %0 = vector.load %arg3[%c0, %c0_0] : memref<8x512xbf16, #tpu.memory_space<vmem>>, vector<8x512xbf16>
    %c0_1 = arith.constant 0 : index
    %c0_2 = arith.constant 0 : index
    %c0_3 = arith.constant 0 : index
    %1 = vector.load %arg5[%c0_1, %c0_2, %c0_3] : memref<1x512x16xbf16, #tpu.memory_space<vmem>>, vector<1x512x16xbf16>
    %2 = vector.shape_cast %1 : vector<1x512x16xbf16> to vector<512x16xbf16>
    %c0_4 = arith.constant 0 : index
    %c0_5 = arith.constant 0 : index
    %3 = vector.load %arg4[%c0_4, %c0_5] : memref<8x1xf32, #tpu.memory_space<vmem>>, vector<8x1xf32>
    %c0_6 = arith.constant 0 : index
    %4 = memref.load %arg2[%c0_6] : memref<2xf32, #tpu.memory_space<smem>>
    %cst = arith.constant dense<0.000000e+00> : vector<8x16xf32>
    %5 = tpu.matmul %0, %2, %cst {dimension_numbers = #tpu.dot_dimension_numbers<[1], [0], [0], [1], [0, 0, 1, 1], [], []>} : vector<8x512xbf16>, vector<512x16xbf16>, vector<8x16xf32> -> vector<8x16xf32>
    %6 = vector.broadcast %3 : vector<8x1xf32> to vector<8x16xf32>
    %7 = arith.addf %5, %6 : vector<8x16xf32>
    %cst_7 = arith.constant 0.000000e+00 : f32
    %8 = vector.broadcast %cst_7 : f32 to vector<8x16xf32>
    %9 = arith.cmpf oge, %7, %8 : vector<8x16xf32>
    %10 = vector.broadcast %4 : f32 to vector<8x16xf32>
    %11 = arith.mulf %10, %7 : vector<8x16xf32>
    %12 = arith.select %9, %7, %11 : vector<8x16xi1>, vector<8x16xf32>
    %c1 = arith.constant 1 : index
    %13 = memref.load %arg2[%c1] : memref<2xf32, #tpu.memory_space<smem>>
    %c0_8 = arith.constant 0 : index
    %c0_9 = arith.constant 0 : index
    %c0_10 = arith.constant 0 : index
    %14 = vector.load %arg6[%c0_8, %c0_9, %c0_10] : memref<1x8x16xf32, #tpu.memory_space<vmem>>, vector<1x8x16xf32>
    %15 = vector.shape_cast %14 : vector<1x8x16xf32> to vector<8x16xf32>
    %16 = vector.broadcast %13 : f32 to vector<8x16xf32>
    %17 = arith.mulf %16, %15 : vector<8x16xf32>
    %18 = arith.addf %12, %17 : vector<8x16xf32>
    %c0_11 = arith.constant 0 : index
    %c0_12 = arith.constant 0 : index
    %c0_13 = arith.constant 0 : index
    %19 = vector.load %arg7[%c0_11, %c0_12, %c0_13] : memref<1x8x16xf32, #tpu.memory_space<vmem>>, vector<1x8x16xf32>
    %20 = vector.shape_cast %19 : vector<1x8x16xf32> to vector<8x16xf32>
    %21 = vector.shape_cast %18 : vector<8x16xf32> to vector<1x8x16xf32>
    tpu.vector_store %arg7[%c0_11, %c0_12, %c0_13], %21 {strides = array<i32>} : memref<1x8x16xf32, #tpu.memory_space<vmem>>, vector<1x8x16xf32>,
    return
  }
  func.func @transform_0(%arg0: i32, %arg1: i32) -> i32 {
    %c0_i32 = arith.constant 0 : i32
    %c0_i32_0 = arith.constant 0 : i32
    return %c0_i32 : i32
  }
  func.func @transform_1(%arg0: i32, %arg1: i32) -> (i32, i32) {
    %c0_i32 = arith.constant 0 : i32
    %c0_i32_0 = arith.constant 0 : i32
    %c0_i32_1 = arith.constant 0 : i32
    return %c0_i32, %c0_i32_0 : i32, i32
  }
  func.func @transform_2(%arg0: i32, %arg1: i32) -> (i32, i32) {
    %c0_i32 = arith.constant 0 : i32
    %c0_i32_0 = arith.constant 0 : i32
    %c0_i32_1 = arith.constant 0 : i32
    return %c0_i32, %c0_i32_0 : i32, i32
  }
  func.func @transform_3(%arg0: i32, %arg1: i32) -> (i32, i32, i32) {
    %c0_i32 = arith.constant 0 : i32
    %c0_i32_0 = arith.constant 0 : i32
    return %arg0, %c0_i32, %arg1 : i32, i32, i32
  }
  func.func @transform_4(%arg0: i32, %arg1: i32) -> (i32, i32, i32) {
    %c0_i32 = arith.constant 0 : i32
    %c0_i32_0 = arith.constant 0 : i32
    return %arg0, %c0_i32, %arg1 : i32, i32, i32
  }
  func.func @transform_5(%arg0: i32, %arg1: i32) -> (i32, i32, i32) {
    %c0_i32 = arith.constant 0 : i32
    %c0_i32_0 = arith.constant 0 : i32
    return %arg0, %c0_i32, %arg1 : i32, i32, i32
  }
}

</mosaic_0001>

<bundles_post_ra>
// kernel: down_block_forward.3
= control target key start
LH: loop header
LB: loop body
LE: loop exit
PB: predicated region body
PF: predicated region fallthrough
CT: control target
= control target key end

     0   :  { %9 = vsyncpa [#allocation3], 0  ;;  %s933_s15 = smov 0   ;;  %s935_s16 = smov 0   ;;  %s1051_s0 = inlined_call_operand.vmem [shape: f32[2], index: 0, kind: input, shape index: {}]   ;;  %s1052_s1 = inlined_call_operand.vmem [shape: bf16[8,512], index: 1, kind: input, shape index: {}]   ;;  %s1053_s2 = inlined_call_operand.vmem [shape: f32[8,1], index: 2, kind: input, shape index: {}]   ;;  %s1054_s3 = inlined_call_operand.vmem [shape: bf16[2,512,16], index: 3, kind: input, shape index: {}]   ;;  %s1055_s4 = inlined_call_operand.vmem [shape: f32[2,8,16], index: 4, kind: output, shape index: {}]  }
   0x1   :  { %s937_s17 = smov 0  }
   0x2 LB: > { %s697_s18 = sadd.s32 4294967295, %s904_s17   ;;  %s27_s19 = sadd.s32 1, %s900_s16  ;;  %s904_s17 = sphi %s937_s17, %s15_s17   ;;  %s900_s16 = sphi %s935_s16, %s1059_s16   ;;  %s896_s15 = sphi %s933_s15, %s1058_s15  }
   0x3   : > { %p29_p0 = scmp.ge.s32.totalorder %s27_s19, 2  ;;  %p699_p1 = scmp.ge.s32.totalorder %s904_s17, 1 }
   0x4   : > { %p151_p2 = scmp.lt.s32.totalorder %s904_s17, 3  ;;  %p958_p4 = scmp.eq.s32.totalorder %s697_s18, 0 }
   0x5   : > { %s1061_s19 = smov (%p29_p0, %s27_s19), 0  ;;  %s164_s24 = sshll.u32 %s1051_s0, 4  ;;  %s165_s24 = int_to_ptr.vmem [resolvable:$true] %s164_s24 }
   0x6   : > { %p954_p3 = pnand %p699_p1, %p151_p2  ;;  %s863_s25 = scalar_lea.vmem %s165_s24, 16 }
   0x7   : > { %p864_p7 = scmp.ne.s32.totalorder %s165_s24, %s863_s25  ;;  %p871_p11 = scmp.lt.s32.totalorder %s165_s24, %s165_s24 }
   0x8   : > { %p794_p5 = pneg %p954_p3  ;;  %p872_p12 = scmp.lt.s32.totalorder %s863_s25, %s863_s25 }
   0xa   : > { %p795_p6 = pnand %p958_p4, %p794_p5  ;;  %p873_p13 = por %p872_p12, %p871_p11 }
   0xc   : > { %p865_p8 = pneg %p795_p6 }
   0xe   : > { %p866_p9 = pnand %p865_p8, %p864_p7 }
  0x10   : > { %p867_p10 = pneg %p866_p9 }
  0x12   : > { %p874_p0 = pnand %p873_p13, %p867_p10 }
  0x14   : > { %877 = shalt.err (!%p874_p0)
}
  0x15   : > { %s906_s26 = smov [#allocation2]   ;;  %194 = sbr.rel (%p954_p3) target bundleno = 293 (0x125), region = 36 }
  0x16   : > { %797 = dma.vmem_to_smem (!%p795_p6), %s165_s24, 16, %s906_s26, [#allocation3]  }
  0x1c   : > { %891 = dma.done.wait (%p958_p4), [#allocation3], 16  }
  0x1d   : > { %893 = vsyncadd (%p958_p4), [#allocation3], 4294967280 }
  0x1e   : > { %200 = sfence }
  0x1f   : > { %p226_p1 = scmp.lt.s32.totalorder %s896_s15, 1  ;;  %v979_v0 = vld [vmem:[%s1052_s1] sm:$0xff]  ;;  %v984_v1 = vld [vmem:[%s1052_s1 + $0x8] sm:$0xff]  ;;  %v907_v5 = vmov 0   ;;  %s309_s11 = sld [smem:[#allocation2]]  ;;  %vm605_vm0 = vcmask 130048  }
  0x20   : > { %v308_v2 = vld [vmem:[%s1053_s2] sm:$0xff]  ;;  %v708_v3 = vcombine.high %v979_v0, %v979_v0  ;;  %v710_v4 = vcombine.high %v984_v1, %v984_v1  ;;  %826 = vset.pattern.permute.xlu0 %v907_v5  ;;  %v707_v38 = vcombine.low %v979_v0, %v979_v0  ;;  %v709_v39 = vcombine.low %v984_v1, %v984_v1 }
  0x21   : > { %s1063_s15 = smov (!%p226_p1, %s896_s15), 1  ;;  %312 = vperm.xlu0 %826, %v308_v2  }
  0x22   : > { %553 = vmatprep.mubr.bf16.mxu0 %v708_v3  ;;  %593 = vmatprep.mubr.bf16.mxu1 %v710_v4  ;;  %s745_s7 = sshll.u32 %s1063_s15, 8  ;;  %s706_s12 = sshll.u32 %s1063_s15, 3 }
  0x23   : > { %s1000_s10 = scalar_lea.vmem %s1054_s3, %s745_s7  ;;  %s240_s18 = scalar_lea.vmem %s1055_s4, %s706_s12 }
  0x24   : > { %v827_v6 = vld [vmem:[%s1000_s10 + $0x40] sm:$0xff]   ;;  %v831_v10 = vld [vmem:[%s1000_s10 + $0x48] sm:$0xff]   ;;  %v835_v14 = vld [vmem:[%s1000_s10 + $0x50] sm:$0xff]  }
  0x25   : > { %v828_v7 = vld [vmem:[%s1000_s10 + $0xc0] sm:$0xff]   ;;  %746 = vmatprep.subr.bf16.mxu0 %v827_v6  ;;  %v832_v11 = vld [vmem:[%s1000_s10 + $0xc8] sm:$0xff]   ;;  %v836_v15 = vld [vmem:[%s1000_s10 + $0xd0] sm:$0xff]   ;;  %v602_v52 = vstv %s309_s11 }
  0x26   : > { %v829_v8 = vld [vmem:[%s1000_s10] sm:$0xff]   ;;  %768 = vmatprep.subr.bf16.mxu1 %v828_v7  ;;  %v833_v12 = vld [vmem:[%s1000_s10 + $0x8] sm:$0xff]   ;;  %v837_v16 = vld [vmem:[%s1000_s10 + $0x10] sm:$0xff]  }
  0x27   : > { %v830_v9 = vld [vmem:[%s1000_s10 + $0x80] sm:$0xff]   ;;  %747 = vmatpush3.bf16.msra.mxu0 %v829_v8  ;;  %v834_v13 = vld [vmem:[%s1000_s10 + $0x88] sm:$0xff]   ;;  %v838_v17 = vld [vmem:[%s1000_s10 + $0x90] sm:$0xff]  }
  0x28   : > { %769 = vmatpush3.bf16.msra.mxu1 %v830_v9  ;;  %748 = vmatprep.subr.bf16.mxu0 %v831_v10  ;;  %v839_v18 = vld [vmem:[%s1000_s10 + $0x58] sm:$0xff]   ;;  %v843_v22 = vld [vmem:[%s1000_s10 + $0x60] sm:$0xff]   ;;  %v847_v26 = vld [vmem:[%s1000_s10 + $0x68] sm:$0xff]  }
  0x29   : > { %770 = vmatprep.subr.bf16.mxu1 %v832_v11  ;;  %v840_v19 = vld [vmem:[%s1000_s10 + $0xd8] sm:$0xff]   ;;  %v844_v23 = vld [vmem:[%s1000_s10 + $0xe0] sm:$0xff]   ;;  %v848_v27 = vld [vmem:[%s1000_s10 + $0xe8] sm:$0xff]  }
  0x2a   : > { %v841_v20 = vld [vmem:[%s1000_s10 + $0x18] sm:$0xff]   ;;  %v845_v24 = vld [vmem:[%s1000_s10 + $0x20] sm:$0xff]   ;;  %v849_v28 = vld [vmem:[%s1000_s10 + $0x28] sm:$0xff]  }
  0x2b   : > { %749 = vmatpush3.bf16.msra.mxu0 %v833_v12  ;;  %v842_v21 = vld [vmem:[%s1000_s10 + $0x98] sm:$0xff]   ;;  %v846_v25 = vld [vmem:[%s1000_s10 + $0xa0] sm:$0xff]   ;;  %v850_v29 = vld [vmem:[%s1000_s10 + $0xa8] sm:$0xff]  }
  0x2c   : > { %771 = vmatpush3.bf16.msra.mxu1 %v834_v13  ;;  %750 = vmatprep.subr.bf16.mxu0 %v835_v14  ;;  %v851_v30 = vld [vmem:[%s1000_s10 + $0x70] sm:$0xff]   ;;  %v855_v34 = vld [vmem:[%s1000_s10 + $0x78] sm:$0xff]  }
  0x2d   : > { %772 = vmatprep.subr.bf16.mxu1 %v836_v15  ;;  %v852_v31 = vld [vmem:[%s1000_s10 + $0xf0] sm:$0xff]   ;;  %v856_v35 = vld [vmem:[%s1000_s10 + $0xf8] sm:$0xff]  }
  0x2e   : > { %v853_v32 = vld [vmem:[%s1000_s10 + $0x30] sm:$0xff]   ;;  %v857_v36 = vld [vmem:[%s1000_s10 + $0x38] sm:$0xff]  }
  0x2f   : > { %751 = vmatpush3.bf16.msra.mxu0 %v837_v16  ;;  %v854_v33 = vld [vmem:[%s1000_s10 + $0xb0] sm:$0xff]   ;;  %v858_v37 = vld [vmem:[%s1000_s10 + $0xb8] sm:$0xff]  }
  0x30   : > { %773 = vmatpush3.bf16.msra.mxu1 %v838_v17  ;;  %752 = vmatprep.subr.bf16.mxu0 %v839_v18 }
  0x31   : > { %774 = vmatprep.subr.bf16.mxu1 %v840_v19 }
  0x33   : > { %753 = vmatpush3.bf16.msra.mxu0 %v841_v20 }
  0x34   : > { %775 = vmatpush3.bf16.msra.mxu1 %v842_v21  ;;  %754 = vmatprep.subr.bf16.mxu0 %v843_v22 }
  0x35   : > { %776 = vmatprep.subr.bf16.mxu1 %v844_v23 }
  0x37   : > { %755 = vmatpush3.bf16.msra.mxu0 %v845_v24 }
  0x38   : > { %777 = vmatpush3.bf16.msra.mxu1 %v846_v25  ;;  %756 = vmatprep.subr.bf16.mxu0 %v847_v26 }
  0x39   : > { %778 = vmatprep.subr.bf16.mxu1 %v848_v27 }
  0x3b   : > { %757 = vmatpush3.bf16.msra.mxu0 %v849_v28 }
  0x3c   : > { %779 = vmatpush3.bf16.msra.mxu1 %v850_v29  ;;  %758 = vmatprep.subr.bf16.mxu0 %v851_v30 }
  0x3d   : > { %780 = vmatprep.subr.bf16.mxu1 %v852_v31 }
  0x3f   : > { %759 = vmatpush3.bf16.msra.mxu0 %v853_v32 }
  0x40   : > { %781 = vmatpush3.bf16.msra.mxu1 %v854_v33  ;;  %760 = vmatprep.subr.bf16.mxu0 %v855_v34 }
  0x41   : > { %782 = vmatprep.subr.bf16.mxu1 %v856_v35 }
  0x43   : > { %761 = vmatpush3.bf16.msra.mxu0 %v857_v36 }
  0x44   : > { %783 = vmatpush3.bf16.msra.mxu1 %v858_v37 }
  0x46   : > { %554 = vmatmul.mubr.bf16.vlgmr.msra.gmra.mrb[0].mxu0 %v707_v38 }
  0x47   : > { %594 = vmatmul.mubr.bf16.vlgmr.msra.gmra.mrb[0].mxu1 %v709_v39 }
  0xa0   : > { %v313_v41 = vpop.permute.xlu0 %312 }
 0x119   : > { %v762_v40 = vpop.f32.mrb[0].mxu0 }
 0x11a   : > { %v784_v42 = vpop.f32.mrb[0].mxu1  ;;  %v763_v43 = vpop.f32.mrb[1].mxu0 }
 0x11b   : > { %v764_v44 = vadd.f32 %v763_v43, %v762_v40  ;;  %v785_v45 = vpop.f32.mrb[1].mxu1  ;;  %v765_v46 = vpop.f32.mrb[2].mxu0 }
 0x11c   : > { %v786_v47 = vadd.f32 %v785_v45, %v784_v42  ;;  %v787_v48 = vpop.f32.mrb[2].mxu1  ;;  %v766_v49 = vpop.f32.mrb[3].mxu0 }
 0x11d   : > { %v556_v50 = vadd.f32 %v764_v44, %v313_v41  ;;  %v788_v51 = vpop.f32.mrb[3].mxu1 }
 0x11f   : > { %v596_v53 = vadd.f32 %v786_v47, %v556_v50 }
 0x121   : > { %vm601_vm1 = vcmp.ge.f32.partialorder %v596_v53, 0.0  ;;  %v603_v54 = vmul.f32 %v602_v52, %v596_v53 }
 0x123   : > { %v604_v55 = vsel %vm601_vm1, %v596_v53, %v603_v54 }
 0x124   : > { %606 = vst.msk [vmem:[%s240_s18] sm:$0xff] %vm605_vm0, %v604_v55 }
 0x125 PF: > { %s15_s17 = sadd.s32 1, %s904_s17   ;;  %s1058_s15 = smov %s900_s16 }
 0x126   : > { %p12_p2 = scmp.ge.s32.totalorder %s15_s17, 4   ;;  %s1059_s16 = smov %s1061_s19 }
 0x128   :  { %14 = sbr.rel (!%p12_p2) target bundleno = 2 (0x2), region = 71 }
 0x12f   :  { %632 = vsyncpa [#allocation3], 1 }
 0x130   :  { %634 = vsyncpa [#allocation3 + $0x1], 1 }

// kernel: down_block_forward.4
= control target key start
LH: loop header
LB: loop body
LE: loop exit
PB: predicated region body
PF: predicated region fallthrough
CT: control target
= control target key end

     0   :  { %10 = vsyncpa [#allocation3], 0  ;;  %s789_s18 = smov 0   ;;  %s791_s19 = smov 0   ;;  %s882_s0 = inlined_call_operand.vmem [shape: f32[2], index: 0, kind: input, shape index: {}]   ;;  %s883_s1 = inlined_call_operand.vmem [shape: bf16[16,8,72], index: 1, kind: input, shape index: {}]   ;;  %s884_s2 = inlined_call_operand.vmem [shape: f32[8,1], index: 2, kind: input, shape index: {}]   ;;  %s885_s3 = inlined_call_operand.vmem [shape: bf16[2,72,16], index: 3, kind: input, shape index: {}]   ;;  %s886_s4 = inlined_call_operand.vmem [shape: f32[16,2,8,16], index: 4, kind: input, shape index: {}]   ;;  %s887_s5 = inlined_call_operand.vmem [shape: f32[16,2,8,16], index: 5, kind: output, shape index: {}]  }
   0x1   :  { %s793_s20 = smov 0   ;;  %s795_s21 = smov 0  }
   0x2   :  { %s797_s22 = smov 0  }
   0x3 LB: > { %s593_s23 = sadd.s32 4294967295, %s753_s22   ;;  %s28_s24 = sadd.s32 1, %s745_s20  ;;  %s753_s22 = sphi %s797_s22, %s16_s22   ;;  %s749_s21 = sphi %s795_s21, %s893_s21   ;;  %s745_s20 = sphi %s793_s20, %s892_s20   ;;  %s741_s19 = sphi %s791_s19, %s891_s19   ;;  %s737_s18 = sphi %s789_s18, %s890_s18  }
   0x4   : > { %p29_p0 = scmp.ge.s32.totalorder %s28_s24, 16  ;;  %s35_s25 = sadd.s32 1, %s749_s21 }
   0x5   : > { %p595_p1 = scmp.ge.s32.totalorder %s753_s22, 1  ;;  %p196_p2 = scmp.lt.s32.totalorder %s753_s22, 33 }
   0x6   : > { %s895_s24 = smov (%p29_p0, %s28_s24), 0  ;;  %s897_s25 = smov (!%p29_p0, %s35_s25), %s749_s21 }
   0x7   : > { %p822_p3 = pnand %p595_p1, %p196_p2  ;;  %p37_p4 = scmp.ge.s32.totalorder %s897_s25, 2 }
   0x8   : > { %p826_p5 = scmp.eq.s32.totalorder %s593_s23, 0  ;;  %s209_s30 = sshll.u32 %s882_s0, 4  ;;  %s210_s30 = int_to_ptr.vmem [resolvable:$true] %s209_s30 }
   0x9   : > { %p640_p6 = pneg %p822_p3  ;;  %s899_s25 = smov (%p37_p4, %s897_s25), 0 }
   0xa   : > { %s696_s6 = scalar_lea.vmem %s210_s30, 16  ;;  %p704_p12 = scmp.lt.s32.totalorder %s210_s30, %s210_s30 }
   0xb   : > { %p641_p7 = pnand %p826_p5, %p640_p6  ;;  %p697_p8 = scmp.ne.s32.totalorder %s210_s30, %s696_s6 }
   0xc   : > { %p705_p13 = scmp.lt.s32.totalorder %s696_s6, %s696_s6 }
   0xd   : > { %p698_p9 = pneg %p641_p7 }
   0xe   : > { %p706_p0 = por %p705_p13, %p704_p12 }
   0xf   : > { %p699_p10 = pnand %p698_p9, %p697_p8 }
  0x11   : > { %p700_p11 = pneg %p699_p10 }
  0x13   : > { %p707_p1 = pnand %p706_p0, %p700_p11 }
  0x15   : > { %710 = shalt.err (!%p707_p1)
}
  0x16   : > { %s755_s7 = smov [#allocation2]   ;;  %257 = sbr.rel (%p822_p3) target bundleno = 278 (0x116), region = 40 }
  0x17   : > { %643 = dma.vmem_to_smem (!%p641_p7), %s210_s30, 16, %s755_s7, [#allocation3]  }
  0x1d   : > { %732 = dma.done.wait (%p826_p5), [#allocation3], 16  }
  0x1e   : > { %734 = vsyncadd (%p826_p5), [#allocation3], 4294967280 }
  0x1f   : > { %263 = sfence }
  0x20   : > { %p314_p2 = scmp.lt.s32.totalorder %s741_s19, 1  ;;  %p310_p4 = scmp.lt.s32.totalorder %s737_s18, 15  ;;  %v756_v0 = vmov 0.0   ;;  %vm757_vm0 = vmmov 0   ;;  %v355_v1 = vld [vmem:[%s884_s2] sm:$0xff]  ;;  %v758_v2 = vmov 0  }
  0x21   : > { %621 = vmatprep.subr.bf16.mxu0 %v756_v0  ;;  %631 = vmatprep.mubr.msk.bf16.mxu0 %vm757_vm0, %v756_v0  ;;  %vm393_vm1 = vcmask 1043456   ;;  %vm389_vm2 = vcmask 588800   ;;  %s612_s26 = sld [smem:[#allocation2 + $0x1]]  ;;  %s356_s27 = sld [smem:[#allocation2]]  ;;  %vm446_vm4 = vcmask 130048  }
  0x22   : > { %s901_s19 = smov (!%p314_p2, %s741_s19), 1  ;;  %690 = vset.pattern.permute.xlu0 %v758_v2  ;;  %s903_s18 = smov (!%p310_p4, %s737_s18), 15 }
  0x23   : > { %359 = vperm.xlu0 %690, %v355_v1   ;;  %s635_s10 = smul.u32 36, %s901_s19  ;;  %s602_s11 = sshll.u32 %s903_s18, 1 }
  0x24   : > { %s855_s15 = sadd.s32 %s602_s11, %s901_s19  ;;  %s600_s16 = sshll.u32 %s903_s18, 2 }
  0x25   : > { %s321_s14 = scalar_lea.vmem %s885_s3, %s635_s10  ;;  %s313_s19 = scalar_lea.vmem %s883_s1, %s600_s16 }
  0x26   : > { %v691_v3 = vld [vmem:[%s321_s14] sm:$0xff]   ;;  %v692_v4 = vld [vmem:[%s321_s14 + $0x8] sm:$0xff]   ;;  %v693_v5 = vld [vmem:[%s321_s14 + $0x10] sm:$0xff]   ;;  %s603_s28 = sshll.u32 %s855_s15, 3 }
  0x27   : > { %622 = vmatpush3.bf16.msra.mxu0 %v691_v3  ;;  %v694_v6 = vld [vmem:[%s321_s14 + $0x18] sm:$0xff]   ;;  %v695_v7 = vld [vmem:[%s321_s14 + $0x20] ss:$0 sps:$4 sm:$0xff]   ;;  %s332_s6 = scalar_lea.vmem %s886_s4, %s603_s28  ;;  %v443_v12 = vstv %s612_s26  ;;  %v438_v14 = vstv %s356_s27  ;;  %s343_s8 = scalar_lea.vmem %s887_s5, %s603_s28 }
  0x28   : > { %623 = vmatprep.subr.bf16.mxu0 %v756_v0  ;;  %v395_v8 = vsel %vm393_vm1, %v695_v7, 0  ;;  %v345_v9 = vld [vmem:[%s313_s19] sm:$0xf] }
  0x29   : > { %v442_v11 = vld [vmem:[%s332_s6] sm:$0xff] }
  0x2a   : > { %v444_v17 = vmul.f32 %v443_v12, %v442_v11 }
  0x2b   : > { %624 = vmatpush3.bf16.msra.mxu0 %v692_v4 }
  0x2c   : > { %625 = vmatprep.subr.bf16.mxu0 %v756_v0 }
  0x2f   : > { %626 = vmatpush3.bf16.msra.mxu0 %v693_v5 }
  0x30   : > { %627 = vmatprep.subr.bf16.mxu0 %v756_v0 }
  0x33   : > { %628 = vmatpush3.bf16.msra.mxu0 %v694_v6 }
  0x34   : > { %629 = vmatprep.subr.bf16.mxu0 %v756_v0 }
  0x37   : > { %630 = vmatpush3.bf16.msra.mxu0 %v395_v8 }
  0x3a   : > { %632 = vmatmul.mubr.msk.bf16.vlgmr.msra.gmra.mrb[0].mxu0 %vm389_vm2, %v345_v9 }
  0xa2   : > { %v360_v10 = vpop.permute.xlu0 %359 }
 0x10d   : > { %v431_v13 = vpop.f32.mrb[0].mxu0 }
 0x10e   : > { %v432_v15 = vadd.f32 %v431_v13, %v360_v10  ;;  %v633_v16 = vpop.f32.mrb[1].mxu0 }
 0x10f   : > { %v434_v18 = vpop.f32.mrb[2].mxu0 }
 0x110   : > { %vm437_vm3 = vcmp.ge.f32.partialorder %v432_v15, 0.0  ;;  %v439_v19 = vmul.f32 %v438_v14, %v432_v15  ;;  %v634_v20 = vpop.f32.mrb[3].mxu0 }
 0x112   : > { %v440_v21 = vsel %vm437_vm3, %v432_v15, %v439_v19 }
 0x113   : > { %v445_v22 = vadd.f32 %v444_v17, %v440_v21 }
 0x115   : > { %447 = vst.msk [vmem:[%s343_s8] sm:$0xff] %vm446_vm4, %v445_v22 }
 0x116 PF: > { %s16_s22 = sadd.s32 1, %s753_s22   ;;  %s890_s18 = smov %s745_s20 }
 0x117   : > { %p13_p3 = scmp.ge.s32.totalorder %s16_s22, 34   ;;  %s891_s19 = smov %s749_s21 }
 0x118   : > { %s892_s20 = smov %s895_s24  ;;  %s893_s21 = smov %s899_s25 }
 0x119   :  { %15 = sbr.rel (!%p13_p3) target bundleno = 3 (0x3), region = 81 }
 0x120   :  { %481 = vsyncpa [#allocation3], 1 }
 0x121   :  { %483 = vsyncpa [#allocation3 + $0x1], 1 }

// kernel: down_block_forward.5
= control target key start
LH: loop header
LB: loop body
LE: loop exit
PB: predicated region body
PF: predicated region fallthrough
CT: control target
= control target key end

     0   :  { %10 = vsyncpa [#allocation3], 0  ;;  %s1015_s18 = smov 0   ;;  %s1017_s19 = smov 0   ;;  %s1136_s0 = inlined_call_operand.vmem [shape: f32[2], index: 0, kind: input, shape index: {}]   ;;  %s1137_s1 = inlined_call_operand.vmem [shape: bf16[8,512], index: 1, kind: input, shape index: {}]   ;;  %s1138_s2 = inlined_call_operand.vmem [shape: f32[8,1], index: 2, kind: input, shape index: {}]   ;;  %s1139_s3 = inlined_call_operand.vmem [shape: bf16[2,512,16], index: 3, kind: input, shape index: {}]   ;;  %s1140_s4 = inlined_call_operand.vmem [shape: f32[2,8,16], index: 4, kind: input, shape index: {}]   ;;  %s1141_s5 = inlined_call_operand.vmem [shape: f32[2,8,16], index: 5, kind: output, shape index: {}]  }
   0x1   :  { %s1019_s20 = smov 0  }
   0x2 LB: > { %s772_s21 = sadd.s32 4294967295, %s981_s20   ;;  %s28_s22 = sadd.s32 1, %s977_s19  ;;  %s981_s20 = sphi %s1019_s20, %s16_s20   ;;  %s977_s19 = sphi %s1017_s19, %s1145_s19   ;;  %s973_s18 = sphi %s1015_s18, %s1144_s18  }
   0x3   : > { %p30_p0 = scmp.ge.s32.totalorder %s28_s22, 2  ;;  %p774_p1 = scmp.ge.s32.totalorder %s981_s20, 1 }
   0x4   : > { %p180_p2 = scmp.lt.s32.totalorder %s981_s20, 3  ;;  %p1040_p4 = scmp.eq.s32.totalorder %s772_s21, 0 }
   0x5   : > { %s1147_s22 = smov (%p30_p0, %s28_s22), 0  ;;  %s193_s27 = sshll.u32 %s1136_s0, 4  ;;  %s194_s27 = int_to_ptr.vmem [resolvable:$true] %s193_s27 }
   0x6   : > { %p1036_p3 = pnand %p774_p1, %p180_p2  ;;  %s940_s28 = scalar_lea.vmem %s194_s27, 16 }
   0x7   : > { %p941_p7 = scmp.ne.s32.totalorder %s194_s27, %s940_s28  ;;  %p948_p11 = scmp.lt.s32.totalorder %s194_s27, %s194_s27 }
   0x8   : > { %p871_p5 = pneg %p1036_p3  ;;  %p949_p12 = scmp.lt.s32.totalorder %s940_s28, %s940_s28 }
   0xa   : > { %p872_p6 = pnand %p1040_p4, %p871_p5  ;;  %p950_p13 = por %p949_p12, %p948_p11 }
   0xc   : > { %p942_p8 = pneg %p872_p6 }
   0xe   : > { %p943_p9 = pnand %p942_p8, %p941_p7 }
  0x10   : > { %p944_p10 = pneg %p943_p9 }
  0x12   : > { %p951_p0 = pnand %p950_p13, %p944_p10 }
  0x14   : > { %954 = shalt.err (!%p951_p0)
}
  0x15   : > { %s983_s29 = smov [#allocation2]   ;;  %233 = sbr.rel (%p1036_p3) target bundleno = 295 (0x127), region = 40 }
  0x16   : > { %874 = dma.vmem_to_smem (!%p872_p6), %s194_s27, 16, %s983_s29, [#allocation3]  }
  0x1c   : > { %968 = dma.done.wait (%p1040_p4), [#allocation3], 16  }
  0x1d   : > { %970 = vsyncadd (%p1040_p4), [#allocation3], 4294967280 }
  0x1e   : > { %239 = sfence }
  0x1f   : > { %p274_p1 = scmp.lt.s32.totalorder %s973_s18, 1  ;;  %v1061_v0 = vld [vmem:[%s1137_s1] sm:$0xff]  ;;  %v1066_v1 = vld [vmem:[%s1137_s1 + $0x8] sm:$0xff]  ;;  %v984_v5 = vmov 0   ;;  %s819_s15 = sld [smem:[#allocation2 + $0x1]]  ;;  %vm665_vm1 = vcmask 130048  }
  0x20   : > { %v363_v2 = vld [vmem:[%s1138_s2] sm:$0xff]  ;;  %v784_v3 = vcombine.high %v1061_v0, %v1061_v0  ;;  %v786_v4 = vcombine.high %v1066_v1, %v1066_v1  ;;  %903 = vset.pattern.permute.xlu0 %v984_v5  ;;  %v783_v38 = vcombine.low %v1061_v0, %v1061_v0  ;;  %v785_v39 = vcombine.low %v1066_v1, %v1066_v1  ;;  %s364_s16 = sld [smem:[#allocation2]] }
  0x21   : > { %s1149_s18 = smov (!%p274_p1, %s973_s18), 1  ;;  %367 = vperm.xlu0 %903, %v363_v2  }
  0x22   : > { %608 = vmatprep.mubr.bf16.mxu0 %v784_v3  ;;  %648 = vmatprep.mubr.bf16.mxu1 %v786_v4  ;;  %s822_s11 = sshll.u32 %s1149_s18, 8  ;;  %s781_s17 = sshll.u32 %s1149_s18, 3 }
  0x23   : > { %s1082_s14 = scalar_lea.vmem %s1139_s3, %s822_s11  ;;  %s288_s24 = scalar_lea.vmem %s1140_s4, %s781_s17 }
  0x24   : > { %v904_v6 = vld [vmem:[%s1082_s14 + $0x40] sm:$0xff]   ;;  %v908_v10 = vld [vmem:[%s1082_s14 + $0x48] sm:$0xff]   ;;  %v912_v14 = vld [vmem:[%s1082_s14 + $0x50] sm:$0xff]   ;;  %s295_s26 = scalar_lea.vmem %s1141_s5, %s781_s17 }
  0x25   : > { %v905_v7 = vld [vmem:[%s1082_s14 + $0xc0] sm:$0xff]   ;;  %823 = vmatprep.subr.bf16.mxu0 %v904_v6  ;;  %v909_v11 = vld [vmem:[%s1082_s14 + $0xc8] sm:$0xff]   ;;  %v913_v15 = vld [vmem:[%s1082_s14 + $0xd0] sm:$0xff]   ;;  %v662_v50 = vstv %s819_s15 }
  0x26   : > { %v906_v8 = vld [vmem:[%s1082_s14] sm:$0xff]   ;;  %845 = vmatprep.subr.bf16.mxu1 %v905_v7  ;;  %v910_v12 = vld [vmem:[%s1082_s14 + $0x8] sm:$0xff]   ;;  %v914_v16 = vld [vmem:[%s1082_s14 + $0x10] sm:$0xff]   ;;  %v657_v54 = vstv %s364_s16 }
  0x27   : > { %v907_v9 = vld [vmem:[%s1082_s14 + $0x80] sm:$0xff]   ;;  %824 = vmatpush3.bf16.msra.mxu0 %v906_v8  ;;  %v911_v13 = vld [vmem:[%s1082_s14 + $0x88] sm:$0xff]   ;;  %v915_v17 = vld [vmem:[%s1082_s14 + $0x90] sm:$0xff]  }
  0x28   : > { %846 = vmatpush3.bf16.msra.mxu1 %v907_v9  ;;  %825 = vmatprep.subr.bf16.mxu0 %v908_v10  ;;  %v916_v18 = vld [vmem:[%s1082_s14 + $0x58] sm:$0xff]   ;;  %v920_v22 = vld [vmem:[%s1082_s14 + $0x60] sm:$0xff]   ;;  %v924_v26 = vld [vmem:[%s1082_s14 + $0x68] sm:$0xff]  }
  0x29   : > { %847 = vmatprep.subr.bf16.mxu1 %v909_v11  ;;  %v917_v19 = vld [vmem:[%s1082_s14 + $0xd8] sm:$0xff]   ;;  %v921_v23 = vld [vmem:[%s1082_s14 + $0xe0] sm:$0xff]   ;;  %v925_v27 = vld [vmem:[%s1082_s14 + $0xe8] sm:$0xff]  }
  0x2a   : > { %v918_v20 = vld [vmem:[%s1082_s14 + $0x18] sm:$0xff]   ;;  %v922_v24 = vld [vmem:[%s1082_s14 + $0x20] sm:$0xff]   ;;  %v926_v28 = vld [vmem:[%s1082_s14 + $0x28] sm:$0xff]  }
  0x2b   : > { %826 = vmatpush3.bf16.msra.mxu0 %v910_v12  ;;  %v919_v21 = vld [vmem:[%s1082_s14 + $0x98] sm:$0xff]   ;;  %v923_v25 = vld [vmem:[%s1082_s14 + $0xa0] sm:$0xff]   ;;  %v927_v29 = vld [vmem:[%s1082_s14 + $0xa8] sm:$0xff]  }
  0x2c   : > { %848 = vmatpush3.bf16.msra.mxu1 %v911_v13  ;;  %827 = vmatprep.subr.bf16.mxu0 %v912_v14  ;;  %v928_v30 = vld [vmem:[%s1082_s14 + $0x70] sm:$0xff]   ;;  %v932_v34 = vld [vmem:[%s1082_s14 + $0x78] sm:$0xff]   ;;  %v661_v52 = vld [vmem:[%s288_s24] sm:$0xff] }
  0x2d   : > { %849 = vmatprep.subr.bf16.mxu1 %v913_v15  ;;  %v929_v31 = vld [vmem:[%s1082_s14 + $0xf0] sm:$0xff]   ;;  %v933_v35 = vld [vmem:[%s1082_s14 + $0xf8] sm:$0xff]   ;;  %v663_v56 = vmul.f32 %v662_v50, %v661_v52 }
  0x2e   : > { %v930_v32 = vld [vmem:[%s1082_s14 + $0x30] sm:$0xff]   ;;  %v934_v36 = vld [vmem:[%s1082_s14 + $0x38] sm:$0xff]  }
  0x2f   : > { %828 = vmatpush3.bf16.msra.mxu0 %v914_v16  ;;  %v931_v33 = vld [vmem:[%s1082_s14 + $0xb0] sm:$0xff]   ;;  %v935_v37 = vld [vmem:[%s1082_s14 + $0xb8] sm:$0xff]  }
  0x30   : > { %850 = vmatpush3.bf16.msra.mxu1 %v915_v17  ;;  %829 = vmatprep.subr.bf16.mxu0 %v916_v18 }
  0x31   : > { %851 = vmatprep.subr.bf16.mxu1 %v917_v19 }
  0x33   : > { %830 = vmatpush3.bf16.msra.mxu0 %v918_v20 }
  0x34   : > { %852 = vmatpush3.bf16.msra.mxu1 %v919_v21  ;;  %831 = vmatprep.subr.bf16.mxu0 %v920_v22 }
  0x35   : > { %853 = vmatprep.subr.bf16.mxu1 %v921_v23 }
  0x37   : > { %832 = vmatpush3.bf16.msra.mxu0 %v922_v24 }
  0x38   : > { %854 = vmatpush3.bf16.msra.mxu1 %v923_v25  ;;  %833 = vmatprep.subr.bf16.mxu0 %v924_v26 }
  0x39   : > { %855 = vmatprep.subr.bf16.mxu1 %v925_v27 }
  0x3b   : > { %834 = vmatpush3.bf16.msra.mxu0 %v926_v28 }
  0x3c   : > { %856 = vmatpush3.bf16.msra.mxu1 %v927_v29  ;;  %835 = vmatprep.subr.bf16.mxu0 %v928_v30 }
  0x3d   : > { %857 = vmatprep.subr.bf16.mxu1 %v929_v31 }
  0x3f   : > { %836 = vmatpush3.bf16.msra.mxu0 %v930_v32 }
  0x40   : > { %858 = vmatpush3.bf16.msra.mxu1 %v931_v33  ;;  %837 = vmatprep.subr.bf16.mxu0 %v932_v34 }
  0x41   : > { %859 = vmatprep.subr.bf16.mxu1 %v933_v35 }
  0x43   : > { %838 = vmatpush3.bf16.msra.mxu0 %v934_v36 }
  0x44   : > { %860 = vmatpush3.bf16.msra.mxu1 %v935_v37 }
  0x46   : > { %609 = vmatmul.mubr.bf16.vlgmr.msra.gmra.mrb[0].mxu0 %v783_v38 }
  0x47   : > { %649 = vmatmul.mubr.bf16.vlgmr.msra.gmra.mrb[0].mxu1 %v785_v39 }
  0xa0   : > { %v368_v41 = vpop.permute.xlu0 %367 }
 0x119   : > { %v839_v40 = vpop.f32.mrb[0].mxu0 }
 0x11a   : > { %v861_v42 = vpop.f32.mrb[0].mxu1  ;;  %v840_v43 = vpop.f32.mrb[1].mxu0 }
 0x11b   : > { %v841_v44 = vadd.f32 %v840_v43, %v839_v40  ;;  %v862_v45 = vpop.f32.mrb[1].mxu1  ;;  %v842_v46 = vpop.f32.mrb[2].mxu0 }
 0x11c   : > { %v863_v47 = vadd.f32 %v862_v45, %v861_v42  ;;  %v864_v48 = vpop.f32.mrb[2].mxu1  ;;  %v843_v49 = vpop.f32.mrb[3].mxu0 }
 0x11d   : > { %v611_v51 = vadd.f32 %v841_v44, %v368_v41  ;;  %v865_v53 = vpop.f32.mrb[3].mxu1 }
 0x11f   : > { %v651_v55 = vadd.f32 %v863_v47, %v611_v51 }
 0x121   : > { %vm656_vm0 = vcmp.ge.f32.partialorder %v651_v55, 0.0  ;;  %v658_v57 = vmul.f32 %v657_v54, %v651_v55 }
 0x123   : > { %v659_v58 = vsel %vm656_vm0, %v651_v55, %v658_v57 }
 0x124   : > { %v664_v59 = vadd.f32 %v663_v56, %v659_v58 }
 0x126   : > { %666 = vst.msk [vmem:[%s295_s26] sm:$0xff] %vm665_vm1, %v664_v59 }
 0x127 PF: > { %s16_s20 = sadd.s32 1, %s981_s20   ;;  %s1144_s18 = smov %s977_s19 }
 0x128   : > { %p13_p2 = scmp.ge.s32.totalorder %s16_s20, 4   ;;  %s1145_s19 = smov %s1147_s22 }
 0x12a   :  { %15 = sbr.rel (!%p13_p2) target bundleno = 2 (0x2), region = 78 }
 0x131   :  { %692 = vsyncpa [#allocation3], 1 }
 0x132   :  { %694 = vsyncpa [#allocation3 + $0x1], 1 }

</bundles_post_ra>
